<compile_context>
chip_gen: v6e
topology: v6e:2x2x1
jax: 0.10.0
libtpu: 0.0.40
codegen_flags: <defaults>
</compile_context>

<pallas_src>
import functools

import jax
import jax.numpy as jnp
from jax import lax
from jax.experimental import pallas as pl
from jax.experimental.pallas import tpu as pltpu

GAMMA = 2.0        # focal gamma (smp default; hard-coded via squaring below)
FOCAL_EPS = 1e-6   # focal norm_factor clamp (smp default)
DICE_EPS = 1e-7    # dice cardinality clamp (smp default)
LANES = 128        # TPU lane width


def _focal_dice_partial_kernel(t_ref, x_ref,
                               fsum_ref, flsum_ref, psum_ref, inter_ref, tcnt_ref,
                               *, num_chunks, tile_p, blocks_per_supertile,
                               valid_hw, has_pad, unroll):
    """Accumulates per-class partial sums for one (batch, supertile, pixel-tile) block.

    t_ref: (1, tile_p) int32 labels      x_ref: (C, tile_p) logits (native dtype)
    out refs: (C, 128) f32 lane-wide partial accumulators (per (batch, supertile)).
    """
    ki = pl.program_id(2)

    @pl.when(ki == 0)
    def _():
        fsum_ref[...] = jnp.zeros_like(fsum_ref)
        flsum_ref[...] = jnp.zeros_like(flsum_ref)
        psum_ref[...] = jnp.zeros_like(psum_ref)
        inter_ref[...] = jnp.zeros_like(inter_ref)
        tcnt_ref[...] = jnp.zeros_like(tcnt_ref)

    c = x_ref.shape[0]
    # Loop-invariant class ids along sublanes (hoisted: JAX does not CSE iota).
    cls_ids = lax.broadcasted_iota(jnp.int32, (c, LANES), 0)
    if has_pad:
        lane_iota = lax.broadcasted_iota(jnp.int32, (1, LANES), 1)
        blk_base = (pl.program_id(1) * blocks_per_supertile + ki) * tile_p

    def chunk(j, carry):
        fsum, flsum, psum, inter, tcnt = carry
        start = pl.multiple_of(j * LANES, LANES)
        sl = pl.ds(start, LANES)
        x = x_ref[:, sl].astype(jnp.float32)         # (C, 128) f32 (in-kernel upcast)
        t = t_ref[:, sl]                             # (1, 128) int32
        msk = cls_ids == t                           # bool one-hot (C, 128)
        y = msk.astype(jnp.float32)

        # --- focal: per-class sigmoid BCE (sigmoid/softplus form, stable for any |x|) ---
        e = jnp.exp(-jnp.abs(x))                     # exp(-|x|)
        r = pl.reciprocal(1.0 + e, approx=False)     # sigmoid(|x|), exact
        z = jnp.where(msk, x, -x)                    # logit of the "true" binary class
        one_m_pt = jnp.where(z >= 0.0, e * r, r)     # sigmoid(-z) = 1 - pt, stable
        logpt = jnp.maximum(-z, 0.0) + jnp.log1p(e)  # softplus(-z) = -log(pt)
        focal = one_m_pt * one_m_pt                  # gamma == 2.0

        # --- dice: softmax over class (sublane) axis, one reciprocal per pixel ---
        m = jnp.max(x, axis=0, keepdims=True)
        es = jnp.exp(x - m)
        inv = pl.reciprocal(jnp.sum(es, axis=0, keepdims=True), approx=False)
        p = es * inv                                 # (C, 128) probs

        if has_pad:                                  # mask out padded pixels
            valid = ((lane_iota + (blk_base + start)) < valid_hw).astype(jnp.float32)
            focal = focal * valid
            p = p * valid
            y = y * valid

        return (fsum + focal,
                flsum + focal * logpt,
                psum + p,
                inter + p * y,
                tcnt + y)

    init = tuple(jnp.zeros((c, LANES), jnp.float32) for _ in range(5))
    fsum, flsum, psum, inter, tcnt = lax.fori_loop(
        0, num_chunks, chunk, init, unroll=unroll)

    fsum_ref[...] += fsum
    flsum_ref[...] += flsum
    psum_ref[...] += psum
    inter_ref[...] += inter
    tcnt_ref[...] += tcnt


def _vmem_limit_bytes():
    """Generation-aware scoped-VMEM limit (v5e/v6e: 128 MiB phys, v7x: 64 MiB)."""
    try:
        cap = pltpu.get_tpu_info().vmem_capacity_bytes
    except Exception:
        cap = 64 << 20  # conservative (v7x) fallback
    return max(32 << 20, (cap * 3) // 4)


def focal_dice_loss(preds, targets, *, tile_p_cap=None):
    """preds: (N, C, H, W) logits (any float dtype); targets: (N, H, W) int class ids."""
    n, c, h, w = preds.shape
    hw = h * w

    # Free views only -- no transpose, no dtype cast, no extra HBM pass.
    x = preds.reshape(n, c, hw)
    t = targets.astype(jnp.int32).reshape(n, 1, hw)

    vmem_limit = _vmem_limit_bytes()
    if tile_p_cap is None:
        # Keep double-buffered inputs under ~half the scoped VMEM limit.
        per_pixel_bytes = (c * x.dtype.itemsize + 4) * 2
        tile_p_cap = max(LANES, ((vmem_limit // 2) // per_pixel_bytes) // LANES * LANES)

    # Pixel super-tiles: P=2 keeps both v7x TensorCores busy even when N is small.
    P = 2 if hw >= 2 * LANES else 1
    hw_per = -(-hw // P)                                 # ceil(hw / P)
    tp = min(tile_p_cap, -(-hw_per // LANES) * LANES)    # lane-aligned, VMEM-capped
    K = -(-hw_per // tp)                                 # pixel blocks per supertile
    hw_pad = P * K * tp
    has_pad = hw_pad != hw
    if has_pad:
        x = jnp.pad(x, ((0, 0), (0, 0), (0, hw_pad - hw)))
        t = jnp.pad(t, ((0, 0), (0, 0), (0, hw_pad - hw)))

    num_chunks = tp // LANES
    unroll = max(1, min(8, num_chunks))

    kernel = functools.partial(
        _focal_dice_partial_kernel, num_chunks=num_chunks, tile_p=tp,
        blocks_per_supertile=K, valid_hw=hw, has_pad=has_pad, unroll=unroll)

    part_shape = jax.ShapeDtypeStruct((n, P, c, LANES), jnp.float32)
    out_spec = pl.BlockSpec((None, None, c, LANES), lambda ni, pi, ki: (ni, pi, 0, 0))
    in_pix_map = lambda ni, pi, ki: (ni, 0, pi * K + ki)

    fsum_p, flsum_p, psum_p, inter_p, tcnt_p = pl.pallas_call(
        kernel,
        out_shape=(part_shape,) * 5,
        grid_spec=pltpu.PrefetchScalarGridSpec(
            num_scalar_prefetch=0,
            grid=(n, P, K),
            in_specs=[
                pl.BlockSpec((None, 1, tp), in_pix_map),   # targets
                pl.BlockSpec((None, c, tp), in_pix_map),   # logits
            ],
            out_specs=(out_spec,) * 5,
        ),
        compiler_params=pltpu.CompilerParams(
            # batch + supertile axes are independent (megacore split); the
            # in-tile pixel axis is the reduction and must stay "arbitrary".
            dimension_semantics=("parallel", "parallel", "arbitrary"),
            vmem_limit_bytes=vmem_limit),
    )(t, x)

    # Tiny epilogue in plain JAX: reduce (N, P, C, 128) partials to (C,) and
    # assemble the scalar loss (O(N*P*C*128) work).
    fsum = jnp.sum(fsum_p, axis=(0, 1, 3))
    flsum = jnp.sum(flsum_p, axis=(0, 1, 3))
    psum = jnp.sum(psum_p, axis=(0, 1, 3))
    inter = jnp.sum(inter_p, axis=(0, 1, 3))
    tcnt = jnp.sum(tcnt_p, axis=(0, 1, 3))

    # focal: normalized=True, reduction='mean', summed over classes
    focal_loss = jnp.sum(flsum / jnp.maximum(fsum, FOCAL_EPS)) / (n * hw)

    # dice: score per class, zero classes with no true pixels, mean over C
    card = psum + tcnt
    score = 2.0 * inter / jnp.maximum(card, DICE_EPS)
    dice_loss = jnp.mean((1.0 - score) * (tcnt > 0).astype(jnp.float32))

    return focal_loss + dice_loss


def _reference(preds, targets):
    """Pure-JAX reference mirroring smp Focal+Dice multiclass semantics."""
    n, c, h, w = preds.shape
    x = preds.astype(jnp.float32)
    y = jax.nn.one_hot(targets, c, axis=1, dtype=jnp.float32)     # (N,C,H,W)

    logpt = jnp.maximum(x, 0.0) - x * y + jnp.log1p(jnp.exp(-jnp.abs(x)))
    pt = jnp.exp(-logpt)
    focal = (1.0 - pt) * (1.0 - pt)
    fsum = jnp.sum(focal, axis=(0, 2, 3))
    flsum = jnp.sum(focal * logpt, axis=(0, 2, 3))
    focal_loss = jnp.sum(flsum / jnp.maximum(fsum, FOCAL_EPS)) / (n * h * w)

    p = jax.nn.softmax(x, axis=1)
    inter = jnp.sum(p * y, axis=(0, 2, 3))
    card = jnp.sum(p + y, axis=(0, 2, 3))
    score = 2.0 * inter / jnp.maximum(card, DICE_EPS)
    mask = (jnp.sum(y, axis=(0, 2, 3)) > 0).astype(jnp.float32)
    dice_loss = jnp.mean((1.0 - score) * mask)
    return focal_loss + dice_loss


if __name__ == "__main__":
    key = jax.random.PRNGKey(0)
    k1, k2 = jax.random.split(key)
    N, C, H, W = 2, 4, 16, 16
    preds = jax.random.normal(k1, (N, C, H, W), jnp.float32)
    targets = jax.random.randint(k2, (N, H, W), 0, C, dtype=jnp.int32)

    loss = jax.block_until_ready(jax.jit(focal_dice_loss)(preds, targets))
    ref = jax.block_until_ready(_reference(preds, targets))
    assert jnp.isfinite(loss), loss
    assert jnp.allclose(loss, ref, rtol=1e-5, atol=1e-5), (loss, ref)
    print("KERNEL_OK")
</pallas_src>

<mosaic_0001>
module attributes {stable_mosaic.version = 11 : i64} {
  func.func @_focal_dice_partial_kernel(%arg0: i32, %arg1: i32, %arg2: i32, %arg3: memref<1x1x128xi32, #tpu.memory_space<vmem>>, %arg4: memref<1x4x128xf32, #tpu.memory_space<vmem>>, %arg5: memref<1x1x4x128xf32, #tpu.memory_space<vmem>>, %arg6: memref<1x1x4x128xf32, #tpu.memory_space<vmem>>, %arg7: memref<1x1x4x128xf32, #tpu.memory_space<vmem>>, %arg8: memref<1x1x4x128xf32, #tpu.memory_space<vmem>>, %arg9: memref<1x1x4x128xf32, #tpu.memory_space<vmem>>) attributes {dimension_semantics = [#tpu.dimension_semantics<parallel>, #tpu.dimension_semantics<parallel>, #tpu.dimension_semantics<arbitrary>], iteration_bounds = array<i64: 2, 2, 1>, scalar_prefetch = 0 : i64, scratch_operands = 0 : i64, tpu.core_type = #tpu.core_type<tc>, window_params = [{transform_indices = @transform_0, window_bounds = array<i64: 1, 1, 128>}, {transform_indices = @transform_1, window_bounds = array<i64: 1, 4, 128>}, {transform_indices = @transform_2, window_bounds = array<i64: 1, 1, 4, 128>}, {transform_indices = @transform_3, window_bounds = array<i64: 1, 1, 4, 128>}, {transform_indices = @transform_4, window_bounds = array<i64: 1, 1, 4, 128>}, {transform_indices = @transform_5, window_bounds = array<i64: 1, 1, 4, 128>}, {transform_indices = @transform_6, window_bounds = array<i64: 1, 1, 4, 128>}]} {
    %c0_i32 = arith.constant 0 : i32
    %0 = arith.cmpi eq, %arg2, %c0_i32 : i32
    %1 = arith.extui %0 : i1 to i32
    %c0_i32_0 = arith.constant 0 : i32
    %2 = arith.cmpi ne, %1, %c0_i32_0 : i32
    scf.if %2 {
      %cst_57 = arith.constant 0.000000e+00 : f32
      %89 = vector.broadcast %cst_57 : f32 to vector<4x128xf32>
      %c0_58 = arith.constant 0 : index
      %c0_59 = arith.constant 0 : index
      %c0_60 = arith.constant 0 : index
      %c0_61 = arith.constant 0 : index
      %90 = vector.load %arg5[%c0_58, %c0_59, %c0_60, %c0_61] : memref<1x1x4x128xf32, #tpu.memory_space<vmem>>, vector<1x1x4x128xf32>
      %91 = vector.shape_cast %90 : vector<1x1x4x128xf32> to vector<4x128xf32>
      %92 = vector.shape_cast %89 : vector<4x128xf32> to vector<1x1x4x128xf32>
      tpu.vector_store %arg5[%c0_58, %c0_59, %c0_60, %c0_61], %92 {strides = array<i32>} : memref<1x1x4x128xf32, #tpu.memory_space<vmem>>, vector<1x1x4x128xf32>,
      %cst_62 = arith.constant 0.000000e+00 : f32
      %93 = vector.broadcast %cst_62 : f32 to vector<4x128xf32>
      %c0_63 = arith.constant 0 : index
      %c0_64 = arith.constant 0 : index
      %c0_65 = arith.constant 0 : index
      %c0_66 = arith.constant 0 : index
      %94 = vector.load %arg6[%c0_63, %c0_64, %c0_65, %c0_66] : memref<1x1x4x128xf32, #tpu.memory_space<vmem>>, vector<1x1x4x128xf32>
      %95 = vector.shape_cast %94 : vector<1x1x4x128xf32> to vector<4x128xf32>
      %96 = vector.shape_cast %93 : vector<4x128xf32> to vector<1x1x4x128xf32>
      tpu.vector_store %arg6[%c0_63, %c0_64, %c0_65, %c0_66], %96 {strides = array<i32>} : memref<1x1x4x128xf32, #tpu.memory_space<vmem>>, vector<1x1x4x128xf32>,
      %cst_67 = arith.constant 0.000000e+00 : f32
      %97 = vector.broadcast %cst_67 : f32 to vector<4x128xf32>
      %c0_68 = arith.constant 0 : index
      %c0_69 = arith.constant 0 : index
      %c0_70 = arith.constant 0 : index
      %c0_71 = arith.constant 0 : index
      %98 = vector.load %arg7[%c0_68, %c0_69, %c0_70, %c0_71] : memref<1x1x4x128xf32, #tpu.memory_space<vmem>>, vector<1x1x4x128xf32>
      %99 = vector.shape_cast %98 : vector<1x1x4x128xf32> to vector<4x128xf32>
      %100 = vector.shape_cast %97 : vector<4x128xf32> to vector<1x1x4x128xf32>
      tpu.vector_store %arg7[%c0_68, %c0_69, %c0_70, %c0_71], %100 {strides = array<i32>} : memref<1x1x4x128xf32, #tpu.memory_space<vmem>>, vector<1x1x4x128xf32>,
      %cst_72 = arith.constant 0.000000e+00 : f32
      %101 = vector.broadcast %cst_72 : f32 to vector<4x128xf32>
      %c0_73 = arith.constant 0 : index
      %c0_74 = arith.constant 0 : index
      %c0_75 = arith.constant 0 : index
      %c0_76 = arith.constant 0 : index
      %102 = vector.load %arg8[%c0_73, %c0_74, %c0_75, %c0_76] : memref<1x1x4x128xf32, #tpu.memory_space<vmem>>, vector<1x1x4x128xf32>
      %103 = vector.shape_cast %102 : vector<1x1x4x128xf32> to vector<4x128xf32>
      %104 = vector.shape_cast %101 : vector<4x128xf32> to vector<1x1x4x128xf32>
      tpu.vector_store %arg8[%c0_73, %c0_74, %c0_75, %c0_76], %104 {strides = array<i32>} : memref<1x1x4x128xf32, #tpu.memory_space<vmem>>, vector<1x1x4x128xf32>,
      %cst_77 = arith.constant 0.000000e+00 : f32
      %105 = vector.broadcast %cst_77 : f32 to vector<4x128xf32>
      %c0_78 = arith.constant 0 : index
      %c0_79 = arith.constant 0 : index
      %c0_80 = arith.constant 0 : index
      %c0_81 = arith.constant 0 : index
      %106 = vector.load %arg9[%c0_78, %c0_79, %c0_80, %c0_81] : memref<1x1x4x128xf32, #tpu.memory_space<vmem>>, vector<1x1x4x128xf32>
      %107 = vector.shape_cast %106 : vector<1x1x4x128xf32> to vector<4x128xf32>
      %108 = vector.shape_cast %105 : vector<4x128xf32> to vector<1x1x4x128xf32>
      tpu.vector_store %arg9[%c0_78, %c0_79, %c0_80, %c0_81], %108 {strides = array<i32>} : memref<1x1x4x128xf32, #tpu.memory_space<vmem>>, vector<1x1x4x128xf32>,
    } else {
    }
    %3 = tpu.iota {dimensions = array<i32: 0>} : vector<4x128xi32>
    %cst = arith.constant 0.000000e+00 : f32
    %4 = vector.broadcast %cst : f32 to vector<4x128xf32>
    %cst_1 = arith.constant 0.000000e+00 : f32
    %5 = vector.broadcast %cst_1 : f32 to vector<4x128xf32>
    %cst_2 = arith.constant 0.000000e+00 : f32
    %6 = vector.broadcast %cst_2 : f32 to vector<4x128xf32>
    %cst_3 = arith.constant 0.000000e+00 : f32
    %7 = vector.broadcast %cst_3 : f32 to vector<4x128xf32>
    %cst_4 = arith.constant 0.000000e+00 : f32
    %8 = vector.broadcast %cst_4 : f32 to vector<4x128xf32>
    %c0_i32_5 = arith.constant 0 : i32
    %c128_i32 = arith.constant 128 : i32
    %9 = arith.muli %c0_i32_5, %c128_i32 : i32
    %10 = tpu.assume_multiple %9, 128 : i32
    %c0 = arith.constant 0 : index
    %c0_6 = arith.constant 0 : index
    %11 = arith.index_cast %10 : i32 to index
    %12 = vector.load %arg4[%c0, %c0_6, %11] : memref<1x4x128xf32, #tpu.memory_space<vmem>>, vector<1x4x128xf32>
    %13 = vector.shape_cast %12 : vector<1x4x128xf32> to vector<4x128xf32>
    %c0_7 = arith.constant 0 : index
    %c0_8 = arith.constant 0 : index
    %14 = arith.index_cast %10 : i32 to index
    %15 = vector.load %arg3[%c0_7, %c0_8, %14] : memref<1x1x128xi32, #tpu.memory_space<vmem>>, vector<1x1x128xi32>
    %16 = vector.shape_cast %15 : vector<1x1x128xi32> to vector<1x128xi32>
    %17 = vector.broadcast %16 : vector<1x128xi32> to vector<4x128xi32>
    %18 = arith.cmpi eq, %3, %17 : vector<4x128xi32>
    %19 = arith.extui %18 : vector<4x128xi1> to vector<4x128xi32>
    %20 = arith.sitofp %19 : vector<4x128xi32> to vector<4x128xf32>
    %21 = math.absf %13 : vector<4x128xf32>
    %cst_9 = arith.constant 0.000000e+00 : f32
    %22 = vector.broadcast %cst_9 : f32 to vector<4x128xf32>
    %23 = arith.subf %22, %21 : vector<4x128xf32>
    %24 = math.exp %23 : vector<4x128xf32>
    %cst_10 = arith.constant 1.000000e+00 : f32
    %25 = vector.broadcast %cst_10 : f32 to vector<4x128xf32>
    %26 = arith.addf %25, %24 : vector<4x128xf32>
    %27 = tpu.reciprocal %26 : vector<4x128xf32> -> vector<4x128xf32>
    %cst_11 = arith.constant 0.000000e+00 : f32
    %28 = vector.broadcast %cst_11 : f32 to vector<4x128xf32>
    %29 = arith.subf %28, %13 : vector<4x128xf32>
    %30 = arith.select %18, %13, %29 : vector<4x128xi1>, vector<4x128xf32>
    %cst_12 = arith.constant 0.000000e+00 : f32
    %31 = vector.broadcast %cst_12 : f32 to vector<4x128xf32>
    %32 = arith.cmpf oge, %30, %31 : vector<4x128xf32>
    %33 = arith.mulf %24, %27 : vector<4x128xf32>
    %34 = arith.select %32, %33, %27 : vector<4x128xi1>, vector<4x128xf32>
    %cst_13 = arith.constant 0.000000e+00 : f32
    %35 = vector.broadcast %cst_13 : f32 to vector<4x128xf32>
    %36 = arith.subf %35, %30 : vector<4x128xf32>
    %cst_14 = arith.constant 0.000000e+00 : f32
    %37 = vector.broadcast %cst_14 : f32 to vector<4x128xf32>
    %38 = arith.maximumf %36, %37 : vector<4x128xf32>
    %39 = math.log1p %24 : vector<4x128xf32>
    %40 = arith.addf %38, %39 : vector<4x128xf32>
    %41 = arith.mulf %34, %34 : vector<4x128xf32>
    %cst_15 = arith.constant dense<0xFF800000> : vector<128xf32>
    %42 = vector.multi_reduction <maximumf>, %13, %cst_15 [0] : vector<4x128xf32> to vector<128xf32>
    %43 = vector.shape_cast %42 : vector<128xf32> to vector<1x128xf32>
    %44 = vector.broadcast %43 : vector<1x128xf32> to vector<4x128xf32>
    %45 = arith.subf %13, %44 : vector<4x128xf32>
    %46 = math.exp %45 : vector<4x128xf32>
    %cst_16 = arith.constant dense<0.000000e+00> : vector<128xf32>
    %47 = vector.multi_reduction <add>, %46, %cst_16 [0] : vector<4x128xf32> to vector<128xf32>
    %48 = vector.shape_cast %47 : vector<128xf32> to vector<1x128xf32>
    %49 = tpu.reciprocal %48 : vector<1x128xf32> -> vector<1x128xf32>
    %50 = vector.broadcast %49 : vector<1x128xf32> to vector<4x128xf32>
    %51 = arith.mulf %46, %50 : vector<4x128xf32>
    %52 = arith.addf %4, %41 : vector<4x128xf32>
    %53 = arith.mulf %41, %40 : vector<4x128xf32>
    %54 = arith.addf %5, %53 : vector<4x128xf32>
    %55 = arith.addf %6, %51 : vector<4x128xf32>
    %56 = arith.mulf %51, %20 : vector<4x128xf32>
    %57 = arith.addf %7, %56 : vector<4x128xf32>
    %58 = arith.addf %8, %20 : vector<4x128xf32>
    %c1_i32 = arith.constant 1 : i32
    %c0_17 = arith.constant 0 : index
    %c0_18 = arith.constant 0 : index
    %c0_19 = arith.constant 0 : index
    %c0_20 = arith.constant 0 : index
    %59 = vector.load %arg5[%c0_17, %c0_18, %c0_19, %c0_20] : memref<1x1x4x128xf32, #tpu.memory_space<vmem>>, vector<1x1x4x128xf32>
    %60 = vector.shape_cast %59 : vector<1x1x4x128xf32> to vector<4x128xf32>
    %61 = arith.addf %60, %52 : vector<4x128xf32>
    %c0_21 = arith.constant 0 : index
    %c0_22 = arith.constant 0 : index
    %c0_23 = arith.constant 0 : index
    %c0_24 = arith.constant 0 : index
    %62 = vector.load %arg5[%c0_21, %c0_22, %c0_23, %c0_24] : memref<1x1x4x128xf32, #tpu.memory_space<vmem>>, vector<1x1x4x128xf32>
    %63 = vector.shape_cast %62 : vector<1x1x4x128xf32> to vector<4x128xf32>
    %64 = vector.shape_cast %61 : vector<4x128xf32> to vector<1x1x4x128xf32>
    tpu.vector_store %arg5[%c0_21, %c0_22, %c0_23, %c0_24], %64 {strides = array<i32>} : memref<1x1x4x128xf32, #tpu.memory_space<vmem>>, vector<1x1x4x128xf32>,
    %c0_25 = arith.constant 0 : index
    %c0_26 = arith.constant 0 : index
    %c0_27 = arith.constant 0 : index
    %c0_28 = arith.constant 0 : index
    %65 = vector.load %arg6[%c0_25, %c0_26, %c0_27, %c0_28] : memref<1x1x4x128xf32, #tpu.memory_space<vmem>>, vector<1x1x4x128xf32>
    %66 = vector.shape_cast %65 : vector<1x1x4x128xf32> to vector<4x128xf32>
    %67 = arith.addf %66, %54 : vector<4x128xf32>
    %c0_29 = arith.constant 0 : index
    %c0_30 = arith.constant 0 : index
    %c0_31 = arith.constant 0 : index
    %c0_32 = arith.constant 0 : index
    %68 = vector.load %arg6[%c0_29, %c0_30, %c0_31, %c0_32] : memref<1x1x4x128xf32, #tpu.memory_space<vmem>>, vector<1x1x4x128xf32>
    %69 = vector.shape_cast %68 : vector<1x1x4x128xf32> to vector<4x128xf32>
    %70 = vector.shape_cast %67 : vector<4x128xf32> to vector<1x1x4x128xf32>
    tpu.vector_store %arg6[%c0_29, %c0_30, %c0_31, %c0_32], %70 {strides = array<i32>} : memref<1x1x4x128xf32, #tpu.memory_space<vmem>>, vector<1x1x4x128xf32>,
    %c0_33 = arith.constant 0 : index
    %c0_34 = arith.constant 0 : index
    %c0_35 = arith.constant 0 : index
    %c0_36 = arith.constant 0 : index
    %71 = vector.load %arg7[%c0_33, %c0_34, %c0_35, %c0_36] : memref<1x1x4x128xf32, #tpu.memory_space<vmem>>, vector<1x1x4x128xf32>
    %72 = vector.shape_cast %71 : vector<1x1x4x128xf32> to vector<4x128xf32>
    %73 = arith.addf %72, %55 : vector<4x128xf32>
    %c0_37 = arith.constant 0 : index
    %c0_38 = arith.constant 0 : index
    %c0_39 = arith.constant 0 : index
    %c0_40 = arith.constant 0 : index
    %74 = vector.load %arg7[%c0_37, %c0_38, %c0_39, %c0_40] : memref<1x1x4x128xf32, #tpu.memory_space<vmem>>, vector<1x1x4x128xf32>
    %75 = vector.shape_cast %74 : vector<1x1x4x128xf32> to vector<4x128xf32>
    %76 = vector.shape_cast %73 : vector<4x128xf32> to vector<1x1x4x128xf32>
    tpu.vector_store %arg7[%c0_37, %c0_38, %c0_39, %c0_40], %76 {strides = array<i32>} : memref<1x1x4x128xf32, #tpu.memory_space<vmem>>, vector<1x1x4x128xf32>,
    %c0_41 = arith.constant 0 : index
    %c0_42 = arith.constant 0 : index
    %c0_43 = arith.constant 0 : index
    %c0_44 = arith.constant 0 : index
    %77 = vector.load %arg8[%c0_41, %c0_42, %c0_43, %c0_44] : memref<1x1x4x128xf32, #tpu.memory_space<vmem>>, vector<1x1x4x128xf32>
    %78 = vector.shape_cast %77 : vector<1x1x4x128xf32> to vector<4x128xf32>
    %79 = arith.addf %78, %57 : vector<4x128xf32>
    %c0_45 = arith.constant 0 : index
    %c0_46 = arith.constant 0 : index
    %c0_47 = arith.constant 0 : index
    %c0_48 = arith.constant 0 : index
    %80 = vector.load %arg8[%c0_45, %c0_46, %c0_47, %c0_48] : memref<1x1x4x128xf32, #tpu.memory_space<vmem>>, vector<1x1x4x128xf32>
    %81 = vector.shape_cast %80 : vector<1x1x4x128xf32> to vector<4x128xf32>
    %82 = vector.shape_cast %79 : vector<4x128xf32> to vector<1x1x4x128xf32>
    tpu.vector_store %arg8[%c0_45, %c0_46, %c0_47, %c0_48], %82 {strides = array<i32>} : memref<1x1x4x128xf32, #tpu.memory_space<vmem>>, vector<1x1x4x128xf32>,
    %c0_49 = arith.constant 0 : index
    %c0_50 = arith.constant 0 : index
    %c0_51 = arith.constant 0 : index
    %c0_52 = arith.constant 0 : index
    %83 = vector.load %arg9[%c0_49, %c0_50, %c0_51, %c0_52] : memref<1x1x4x128xf32, #tpu.memory_space<vmem>>, vector<1x1x4x128xf32>
    %84 = vector.shape_cast %83 : vector<1x1x4x128xf32> to vector<4x128xf32>
    %85 = arith.addf %84, %58 : vector<4x128xf32>
    %c0_53 = arith.constant 0 : index
    %c0_54 = arith.constant 0 : index
    %c0_55 = arith.constant 0 : index
    %c0_56 = arith.constant 0 : index
    %86 = vector.load %arg9[%c0_53, %c0_54, %c0_55, %c0_56] : memref<1x1x4x128xf32, #tpu.memory_space<vmem>>, vector<1x1x4x128xf32>
    %87 = vector.shape_cast %86 : vector<1x1x4x128xf32> to vector<4x128xf32>
    %88 = vector.shape_cast %85 : vector<4x128xf32> to vector<1x1x4x128xf32>
    tpu.vector_store %arg9[%c0_53, %c0_54, %c0_55, %c0_56], %88 {strides = array<i32>} : memref<1x1x4x128xf32, #tpu.memory_space<vmem>>, vector<1x1x4x128xf32>,
    return
  }
  func.func @transform_0(%arg0: i32, %arg1: i32, %arg2: i32) -> (i32, i32, i32) {
    %c1_i32 = arith.constant 1 : i32
    %0 = arith.muli %arg1, %c1_i32 : i32
    %1 = arith.addi %0, %arg2 : i32
    %c0_i32 = arith.constant 0 : i32
    %c0_i32_0 = arith.constant 0 : i32
    return %arg0, %c0_i32, %1 : i32, i32, i32
  }
  func.func @transform_1(%arg0: i32, %arg1: i32, %arg2: i32) -> (i32, i32, i32) {
    %c1_i32 = arith.constant 1 : i32
    %0 = arith.muli %arg1, %c1_i32 : i32
    %1 = arith.addi %0, %arg2 : i32
    %c0_i32 = arith.constant 0 : i32
    %c0_i32_0 = arith.constant 0 : i32
    return %arg0, %c0_i32, %1 : i32, i32, i32
  }
  func.func @transform_2(%arg0: i32, %arg1: i32, %arg2: i32) -> (i32, i32, i32, i32) {
    %c0_i32 = arith.constant 0 : i32
    %c0_i32_0 = arith.constant 0 : i32
    %c0_i32_1 = arith.constant 0 : i32
    return %arg0, %arg1, %c0_i32, %c0_i32_0 : i32, i32, i32, i32
  }
  func.func @transform_3(%arg0: i32, %arg1: i32, %arg2: i32) -> (i32, i32, i32, i32) {
    %c0_i32 = arith.constant 0 : i32
    %c0_i32_0 = arith.constant 0 : i32
    %c0_i32_1 = arith.constant 0 : i32
    return %arg0, %arg1, %c0_i32, %c0_i32_0 : i32, i32, i32, i32
  }
  func.func @transform_4(%arg0: i32, %arg1: i32, %arg2: i32) -> (i32, i32, i32, i32) {
    %c0_i32 = arith.constant 0 : i32
    %c0_i32_0 = arith.constant 0 : i32
    %c0_i32_1 = arith.constant 0 : i32
    return %arg0, %arg1, %c0_i32, %c0_i32_0 : i32, i32, i32, i32
  }
  func.func @transform_5(%arg0: i32, %arg1: i32, %arg2: i32) -> (i32, i32, i32, i32) {
    %c0_i32 = arith.constant 0 : i32
    %c0_i32_0 = arith.constant 0 : i32
    %c0_i32_1 = arith.constant 0 : i32
    return %arg0, %arg1, %c0_i32, %c0_i32_0 : i32, i32, i32, i32
  }
  func.func @transform_6(%arg0: i32, %arg1: i32, %arg2: i32) -> (i32, i32, i32, i32) {
    %c0_i32 = arith.constant 0 : i32
    %c0_i32_0 = arith.constant 0 : i32
    %c0_i32_1 = arith.constant 0 : i32
    return %arg0, %arg1, %c0_i32, %c0_i32_0 : i32, i32, i32, i32
  }
}

</mosaic_0001>

<bundles_post_ra>
// kernel: focal_dice_loss.1
= control target key start
LH: loop header
LB: loop body
LE: loop exit
PB: predicated region body
PF: predicated region fallthrough
CT: control target
= control target key end

     0   :  { %s940_s21 = smov 0   ;;  %s942_s22 = smov 0   ;;  %s1030_s0 = inlined_call_operand.vmem [shape: s32[2,1,256], index: 0, kind: input, shape index: {}]   ;;  %s1031_s1 = inlined_call_operand.vmem [shape: f32[2,4,256], index: 1, kind: input, shape index: {}]   ;;  %s1032_s2 = inlined_call_operand.vmem [shape: f32[2,2,4,128], index: 2, kind: output, shape index: {0}]   ;;  %s1033_s3 = inlined_call_operand.vmem [shape: f32[2,2,4,128], index: 3, kind: output, shape index: {1}]   ;;  %s1034_s4 = inlined_call_operand.vmem [shape: f32[2,2,4,128], index: 4, kind: output, shape index: {2}]   ;;  %s1035_s5 = inlined_call_operand.vmem [shape: f32[2,2,4,128], index: 5, kind: output, shape index: {3}]   ;;  %s1036_s6 = inlined_call_operand.vmem [shape: f32[2,2,4,128], index: 6, kind: output, shape index: {4}]  }
   0x1   :  { %s944_s23 = smov 0   ;;  %s946_s24 = smov 0  }
   0x2   :  { %s948_s25 = smov 0  }
   0x3 LB: > { %s32_s26 = sadd.s32 1, %s894_s23  ;;  %s36_s27 = sadd.s32 1, %s898_s24  ;;  %s902_s25 = sphi %s948_s25, %s17_s25   ;;  %s898_s24 = sphi %s946_s24, %s1040_s24   ;;  %s894_s23 = sphi %s944_s23, %s1039_s23   ;;  %s890_s22 = sphi %s942_s22, %s1038_s22   ;;  %s886_s21 = sphi %s940_s21, %s1037_s21  }
   0x4   : > { %p34_p0 = scmp.ge.s32.totalorder %s32_s26, 2  ;;  %p795_p1 = scmp.ge.s32.totalorder %s902_s25, 1 }
   0x5   : > { %p277_p2 = scmp.lt.s32.totalorder %s902_s25, 5 }
   0x6   : > { %s1042_s26 = smov (%p34_p0, %s32_s26), 0  ;;  %s1044_s27 = smov (!%p34_p0, %s36_s27), %s898_s24 }
   0x7   : > { %p278_p3 = pnand %p795_p1, %p277_p2  ;;  %p38_p4 = scmp.ge.s32.totalorder %s1044_s27, 2 }
   0x8   : > { %p355_p5 = scmp.lt.s32.totalorder (!%p278_p3), %s890_s22, 1  ;;  %p357_p6 = scmp.lt.s32.totalorder (!%p278_p3), %s886_s21, 1 }
   0x9   : > { %s1046_s27 = smov (%p38_p4, %s1044_s27), 0  ;;  %281 = sbr.rel (%p278_p3) target bundleno = 87 (0x57), region = 28 }
   0xe   : > { %s1048_s22 = smov (!%p355_p5, %s890_s22), 1  ;;  %s1050_s21 = smov (!%p357_p6, %s886_s21), 1  ;;  %v904_v0 = vmov 0.0   ;;  %v422_v1 = vlaneseq  ;;  %vm457_vm0 = vcmask 1043456  }
   0xf   : > { %s796_s28 = sshll.u32 %s1048_s22, 1 }
  0x10   : > { %s360_s29 = sadd.s32 %s796_s28, %s1050_s21  ;;  %v423_v5 = vshrl.u32 %v422_v1, 7 }
  0x11   : > { %s798_s30 = sshll.u32 %s360_s29, 2  ;;  %s361_s11 = scalar_lea.vmem %s1030_s0, %s360_s29 }
  0x12   : > { %s973_s9 = scalar_lea.vmem %s1032_s2, %s798_s30  ;;  %s978_s12 = scalar_lea.vmem %s1033_s3, %s798_s30  ;;  %v809_v7 = vld [vmem:[%s361_s11] ss:$0 sm:$0xff] }
  0x13   : > { %417 = vst [vmem:[%s973_s9] sm:$0xf] %v904_v0  ;;  %418 = vst [vmem:[%s978_s12] sm:$0xf] %v904_v0  ;;  %s985_s15 = scalar_lea.vmem %s1034_s4, %s798_s30  ;;  %s990_s18 = scalar_lea.vmem %s1035_s5, %s798_s30  ;;  %vm430_vm1 = vcmp.eq.s32.totalorder %v423_v5, %v809_v7 }
  0x14   : > { %419 = vst [vmem:[%s985_s15] sm:$0xf] %v904_v0  ;;  %420 = vst [vmem:[%s990_s18] sm:$0xf] %v904_v0  ;;  %s412_s21 = scalar_lea.vmem %s1036_s6, %s798_s30  ;;  %s371_s7 = scalar_lea.vmem %s1031_s1, %s798_s30  ;;  %v810_v12 = vsel %vm430_vm1, 1.0, %v904_v0 }
  0x15   : > { %421 = vst [vmem:[%s412_s21] sm:$0xf] %v904_v0  ;;  %v424_v2 = vld [vmem:[%s371_s7] sm:$0xf] }
  0x16   : > { %v433_v3 = vand.u32 2147483647, %v424_v2  ;;  %v458_v4 = vsel %vm457_vm0, %v424_v2, -inf  ;;  %v439_v22 = vsub.f32 0.0, %v424_v2 }
  0x17   : > { %v459_v6 = vrot.slane %v458_v4, 4 }
  0x18   : > { %v434_v8 = vsub.f32 0.0, %v433_v3  ;;  %v440_v24 = vsel %vm430_vm1, %v424_v2, %v439_v22 }
  0x19   : > { %v460_v9 = vmax.f32 %v458_v4, %v459_v6  ;;  %v444_v28 = vsub.f32 0.0, %v440_v24  ;;  %vm441_vm2 = vcmp.ge.f32.partialorder %v440_v24, 0.0 }
  0x1a   : > { %v435_v10 = vmul.f32 1.442695, %v434_v8  ;;  %v484_v40 = vld [vmem:[%s973_s9] sm:$0xf] }
  0x1b   : > { %v461_v11 = vrot.slane %v460_v9, 2  ;;  %v445_v36 = vmax.f32 %v444_v28, 0.0  ;;  %v487_v47 = vld [vmem:[%s978_s12] sm:$0xf] }
  0x1c   : > { %854 = vpow2.f32 %v435_v10  ;;  %v496_v13 = vld [vmem:[%s412_s21] sm:$0xf] }
  0x1d   : > { %v462_v14 = vmax.f32 %v460_v9, %v461_v11  ;;  %v497_v15 = vadd.f32 %v810_v12, %v496_v13  ;;  %v490_v52 = vld [vmem:[%s985_s15] sm:$0xf] }
  0x1e   : > { %v493_v54 = vld [vmem:[%s990_s18] sm:$0xf] }
  0x1f   : > { %v463_v16 = vrot.slane %v462_v14, 1  ;;  %498 = vst [vmem:[%s412_s21] sm:$0xf] %v497_v15 }
  0x21   : > { %v464_v17 = vmax.f32 %v462_v14, %v463_v16 }
  0x23   : > { %v465_v18 = vsub.f32 %v424_v2, %v464_v17 }
  0x25   : > { %v466_v19 = vmul.f32 1.442695, %v465_v18 }
  0x27   : > { %856 = vpow2.f32 %v466_v19 }
  0x29   : > { %v855_v20 = vpop.eup %854 }
  0x2a   : > { %v437_v21 = vadd.f32 1.0, %v855_v20  ;;  %v449_v23 = vmul.f32 -0.5, %v855_v20  ;;  %v452_v29 = vand.u32 2147483647, %v855_v20 }
  0x2c   : > { %858 = vrcp.f32 %v437_v21  ;;  %v450_v26 = vadd.f32 1.0, %v449_v23  ;;  %vm453_vm3 = vcmp.lt.f32.partialorder %v452_v29, 0.0004427343 }
  0x2d   : > { %860 = vlog2.f32 %v437_v21 }
  0x2e   : > { %v451_v33 = vmul.f32 %v855_v20, %v450_v26 }
  0x34   : > { %v857_v25 = vpop.eup %856 }
  0x35   : > { %v468_v27 = vsel %vm457_vm0, %v857_v25, 0.0 }
  0x36   : > { %v469_v30 = vrot.slane %v468_v27, 4 }
  0x38   : > { %v470_v31 = vadd.f32 %v469_v30, %v468_v27 }
  0x39   : > { %v859_v32 = vpop.eup %858 }
  0x3a   : > { %v861_v34 = vpop.eup %860  ;;  %v442_v35 = vmul.f32 %v859_v32, %v855_v20  ;;  %v471_v37 = vrot.slane %v470_v31, 2 }
  0x3b   : > { %v448_v38 = vmul.f32 0.6931472, %v861_v34 }
  0x3c   : > { %v443_v39 = vsel %vm441_vm2, %v442_v35, %v859_v32  ;;  %v472_v41 = vadd.f32 %v471_v37, %v470_v31 }
  0x3d   : > { %v456_v42 = vmul.f32 %v443_v39, %v443_v39  ;;  %v454_v43 = vsel %vm453_vm3, %v451_v33, %v448_v38 }
  0x3e   : > { %v455_v44 = vadd.f32 %v454_v43, %v445_v36  ;;  %v473_v45 = vrot.slane %v472_v41, 1 }
  0x3f   : > { %v485_v46 = vadd.f32 %v484_v40, %v456_v42 }
  0x40   : > { %v478_v48 = vmul.f32 %v456_v42, %v455_v44  ;;  %v474_v49 = vadd.f32 %v473_v45, %v472_v41 }
  0x41   : > { %486 = vst [vmem:[%s973_s9] sm:$0xf] %v485_v46 }
  0x42   : > { %v488_v50 = vadd.f32 %v487_v47, %v478_v48  ;;  %862 = vrcp.f32 %v474_v49 }
  0x44   : > { %489 = vst [vmem:[%s978_s12] sm:$0xf] %v488_v50 }
  0x4f   : > { %v863_v51 = vpop.eup %862 }
  0x50   : > { %v476_v53 = vmul.f32 %v863_v51, %v857_v25 }
  0x52   : > { %v491_v55 = vadd.f32 %v490_v52, %v476_v53  ;;  %v481_v56 = vmul.f32 %v810_v12, %v476_v53 }
  0x54   : > { %492 = vst [vmem:[%s985_s15] sm:$0xf] %v491_v55  ;;  %v494_v57 = vadd.f32 %v493_v54, %v481_v56 }
  0x56   : > { %495 = vst [vmem:[%s990_s18] sm:$0xf] %v494_v57 }
  0x57 PF: > { %s17_s25 = sadd.s32 1, %s902_s25   ;;  %s1037_s21 = smov %s894_s23 }
  0x58   : > { %p14_p7 = scmp.ge.s32.totalorder %s17_s25, 6   ;;  %s1038_s22 = smov %s898_s24 }
  0x59   : > { %s1039_s23 = smov %s1042_s26  ;;  %s1040_s24 = smov %s1046_s27 }
  0x5a   :  { %16 = sbr.rel (!%p14_p7) target bundleno = 3 (0x3), region = 113 }

</bundles_post_ra>
